<compile_context>
chip_gen: v5e
topology: v5e:2x2
jax: 0.10.0
libtpu: 0.0.40
codegen_flags: <defaults>
</compile_context>

<pallas_src>
import math
import functools

import jax
import jax.numpy as jnp
from jax import lax
from jax.experimental import pallas as pl
from jax.experimental.pallas import tpu as pltpu


def _round_up(x, m):
    return (x + m - 1) // m * m


def rnn_forecast_kernel(
    x_ref,        # (1, S*TB, Kf) bf16  fused [x_{t-1}|x_t|x_{t+1}|mark], rows (s, b)
    posb_ref,     # (S, Dp)       f32   pos @ W_ih + b_ih + b_hh (zero padded)
    wfused_ref,   # (Kf, Dp)      bf16  [wc0;wc1;wc2;wt] @ W_ih
    whh_ref,      # (Dp, Dp)      bf16  W_hh (x @ W orientation, zero padded)
    w1_ref,       # (Dp, Dp)      bf16  projection layer 1
    b1_ref,       # (1, Dp)       f32
    w2_ref,       # (Dp, CPp)     bf16  projection layer 2
    b2_ref,       # (1, CPp)      f32
    out_ref,      # (TB, CPp)     f32
    emb_scratch,  # VMEM (S*TB, Dp) f32 — per-timestep RNN input contribution
    *, seq_len, batch_tile, split_chains, unroll,
):
    S = seq_len
    TB = batch_tile
    bf16 = jnp.bfloat16
    f32 = jnp.float32

    xb = x_ref[0]  # (S*TB, Kf)

    # Fused DataEmbedding + RNN input contribution in one MXU push:
    #   emb_scratch = x @ (W_emb @ W_ih)        (per-timestep bias added below)
    # TODO(synk): nn.Dropout in DataEmbedding is identity here (inference); the
    # algebraic fold above is only valid in eval mode.
    emb_scratch[...] = jnp.dot(xb, wfused_ref[...], preferred_element_type=f32)

    # Add the per-timestep bias (pos@W_ih + b_ih + b_hh) once per TB-row block,
    # in bulk and off the serial recurrence path.
    for s in range(S):
        blk = pl.ds(s * TB, TB)
        emb_scratch[blk] = emb_scratch[blk] + posb_ref[pl.ds(s, 1)]

    # --- nn.RNN (single layer, tanh). h0 == 0, so step 0 skips the h@W_hh dot.
    if split_chains:
        # Two independent recurrence chains (batch sub-tiles) per step hide the
        # matmul -> pop -> add -> tanh latency chain.
        TBh = TB // 2
        ha = jnp.tanh(emb_scratch[pl.ds(0, TBh)])
        hb = jnp.tanh(emb_scratch[pl.ds(TBh, TBh)])

        def step(t, carry):
            ha, hb = carry
            base = pl.multiple_of(t * TB, TB)
            whh = whh_ref[...]
            xa = emb_scratch[pl.ds(base, TBh)]
            xb2 = emb_scratch[pl.ds(base + TBh, TBh)]
            ha = jnp.tanh(
                xa + jnp.dot(ha.astype(bf16), whh, preferred_element_type=f32))
            hb = jnp.tanh(
                xb2 + jnp.dot(hb.astype(bf16), whh, preferred_element_type=f32))
            return ha, hb

        ha, hb = lax.fori_loop(1, S, step, (ha, hb), unroll=unroll)
        h_last = jnp.concatenate([ha, hb], axis=0)
    else:
        h1 = jnp.tanh(emb_scratch[pl.ds(0, TB)])

        def step(t, h):
            base = pl.multiple_of(t * TB, TB)
            xt = emb_scratch[pl.ds(base, TB)]
            return jnp.tanh(
                xt + jnp.dot(h.astype(bf16), whh_ref[...],
                             preferred_element_type=f32))

        h_last = lax.fori_loop(1, S, step, h1, unroll=unroll)

    # --- projection MLP on the last hidden state ---
    z = jnp.maximum(
        jnp.dot(h_last.astype(bf16), w1_ref[...], preferred_element_type=f32)
        + b1_ref[...],
        0.0,
    )
    out_ref[...] = (
        jnp.dot(z.astype(bf16), w2_ref[...], preferred_element_type=f32)
        + b2_ref[...]
    )


def rnn_forecast(x_enc, x_mark, params, *, pred_len, batch_tile=None):
    """params: dict of (unpadded, f32) weights; returns [B, pred_len, enc_in]."""
    B, S, C = x_enc.shape
    F = x_mark.shape[-1]
    D = params["wih"].shape[0]
    CP = C * pred_len

    # Batch tile: feed the MXU >=128 rows whenever the batch allows it
    # (256 matches the v6e/v7x MXU). G = B//TB > 1 also lets the "parallel"
    # grid axis shard across the two TensorCores on v7x.
    if batch_tile is None:
        TB = B
        for cand in (256, 128):
            if B % cand == 0:
                TB = cand
                break
    else:
        TB = batch_tile
    assert B % TB == 0, "batch must divide evenly into tiles"
    assert TB == B or TB % 8 == 0, "sub-batch tiles must be sublane aligned"
    G = B // TB

    Dp = _round_up(D, 128)     # lane-dense hidden width
    CPp = _round_up(CP, 128)   # lane-dense output width
    Kf = 3 * C + F             # fused embedding contraction dim

    f32, bf16 = jnp.float32, jnp.bfloat16

    def pad2(a, r, c, dtype):
        a = jnp.asarray(a, f32)
        return jnp.pad(a, ((0, r - a.shape[0]), (0, c - a.shape[1]))).astype(dtype)

    # Algebraic fold (valid because dropout is identity in eval mode):
    #   (x@W_emb + pos) @ W_ih + b_ih + h@W_hh + b_hh
    # = x @ (W_emb @ W_ih) + (pos @ W_ih + b_ih + b_hh) + h @ W_hh
    wemb = jnp.concatenate(
        [params["wc0"], params["wc1"], params["wc2"], params["wt"]], axis=0)
    wfused = pad2(wemb @ params["wih"], Kf, Dp, bf16)
    posb = pad2(params["pos"] @ params["wih"] + params["bih"] + params["bhh"],
                S, Dp, f32)
    whh = pad2(params["whh"], Dp, Dp, bf16)
    w1 = pad2(params["w1"], Dp, Dp, bf16)
    b1 = pad2(params["b1"], 1, Dp, f32)
    w2 = pad2(params["w2"], Dp, CPp, bf16)
    b2 = pad2(params["b2"], 1, CPp, f32)

    # Fused input slab, tile-time-major: (G, S*TB, Kf), row = s*TB + b_local.
    # Circular conv1d(k=3) taps -> [x_{t-1} | x_t | x_{t+1} | mark].
    xcat = jnp.concatenate(
        [jnp.roll(x_enc, 1, axis=1), x_enc, jnp.roll(x_enc, -1, axis=1), x_mark],
        axis=-1,
    ).astype(bf16)
    xg = (xcat.reshape(G, TB, S, Kf)
               .transpose(0, 2, 1, 3)
               .reshape(G, S * TB, Kf))

    full = lambda shape: pl.BlockSpec(shape, lambda g: (0,) * len(shape))
    # TODO(synk): grid-invariant weight blocks could be single-buffered
    # (pipeline_mode=pl.Buffered(1)) to halve their VMEM footprint on v7x.

    grid_spec = pltpu.PrefetchScalarGridSpec(
        num_scalar_prefetch=0,
        grid=(G,),
        in_specs=[
            pl.BlockSpec((1, S * TB, Kf), lambda g: (g, 0, 0)),
            full((S, Dp)),
            full((Kf, Dp)),
            full((Dp, Dp)),
            full((Dp, Dp)),
            full((1, Dp)),
            full((Dp, CPp)),
            full((1, CPp)),
        ],
        out_specs=pl.BlockSpec((TB, CPp), lambda g: (g, 0)),
        # NOTE: for large S*TB*Dp on v7x (64 MiB VMEM), switch this scratch to
        # bf16 or halve TB; f32 is fine at these sizes.
        scratch_shapes=[pltpu.VMEM((S * TB, Dp), jnp.float32)],
    )

    kernel = functools.partial(
        rnn_forecast_kernel,
        seq_len=S,
        batch_tile=TB,
        split_chains=(TB % 16 == 0),       # two >=8-sublane chains per tile
        unroll=True if S <= 16 else 8,     # full unroll only for short seqs
    )

    out = pl.pallas_call(
        kernel,
        out_shape=jax.ShapeDtypeStruct((B, CPp), jnp.float32),
        grid_spec=grid_spec,
        compiler_params=pltpu.CompilerParams(
            dimension_semantics=("parallel",),
            vmem_limit_bytes=64 * 1024 * 1024,
        ),
    )(xg, posb, wfused, whh, w1, b1, w2, b2)

    # glue: drop lane padding and view(B, pred_len, enc_in)
    return out[:, :CP].reshape(B, pred_len, C)


def ref_forward(x_enc, x_mark, params, *, pred_len):
    """Pure-JAX f32 reference (mirrors the PyTorch forward)."""
    B, S, C = x_enc.shape
    x_m1 = jnp.roll(x_enc, 1, axis=1)
    x_p1 = jnp.roll(x_enc, -1, axis=1)
    emb = (
        x_m1 @ params["wc0"]
        + x_enc @ params["wc1"]
        + x_p1 @ params["wc2"]
        + x_mark @ params["wt"]
        + params["pos"][None]
    )
    h = jnp.zeros((B, params["wih"].shape[0]), jnp.float32)
    for t in range(S):
        h = jnp.tanh(emb[:, t] @ params["wih"] + params["bih"][0]
                     + h @ params["whh"] + params["bhh"][0])
    z = jnp.maximum(h @ params["w1"] + params["b1"][0], 0.0)
    y = z @ params["w2"] + params["b2"][0]
    return y.reshape(B, pred_len, C)


def make_params(key, *, seq_len, enc_in, d_model, n_time_feats, pred_len):
    keys = jax.random.split(key, 12)
    s = 0.1
    norm = lambda k, shp: (s * jax.random.normal(k, shp)).astype(jnp.float32)

    # fixed sinusoidal positional embedding (first seq_len positions)
    position = jnp.arange(seq_len, dtype=jnp.float32)[:, None]
    div_term = jnp.exp(
        jnp.arange(0, d_model, 2, dtype=jnp.float32) * (-math.log(10000.0) / d_model)
    )
    pe = jnp.zeros((seq_len, d_model), jnp.float32)
    pe = pe.at[:, 0::2].set(jnp.sin(position * div_term))
    pe = pe.at[:, 1::2].set(jnp.cos(position * div_term))

    # Weights stored in "x @ W" orientation (i.e. already-transposed vs PyTorch).
    # TODO(synk): multi-layer nn.RNN (e_layers > 1) not implemented; single layer.
    return {
        "pos": pe,
        "wc0": norm(keys[0], (enc_in, d_model)),
        "wc1": norm(keys[1], (enc_in, d_model)),
        "wc2": norm(keys[2], (enc_in, d_model)),
        "wt": norm(keys[3], (n_time_feats, d_model)),
        "wih": norm(keys[4], (d_model, d_model)),
        "bih": norm(keys[5], (1, d_model)),
        "whh": norm(keys[6], (d_model, d_model)),
        "bhh": norm(keys[7], (1, d_model)),
        "w1": norm(keys[8], (d_model, d_model)),
        "b1": norm(keys[9], (1, d_model)),
        "w2": norm(keys[10], (d_model, enc_in * pred_len)),
        "b2": norm(keys[11], (1, enc_in * pred_len)),
    }


if __name__ == "__main__":
    B, S, C, D, P = 2, 8, 4, 32, 4   # batch, seq_len, enc_in, d_model, pred_len
    F = 4                            # time features (freq='h', embed='timeF')

    key = jax.random.PRNGKey(0)
    k_x, k_m, k_p = jax.random.split(key, 3)
    x_enc = jax.random.normal(k_x, (B, S, C), jnp.float32)
    x_mark = jax.random.normal(k_m, (B, S, F), jnp.float32)
    params = make_params(k_p, seq_len=S, enc_in=C, d_model=D,
                         n_time_feats=F, pred_len=P)

    fwd = jax.jit(functools.partial(rnn_forecast, pred_len=P))
    out = fwd(x_enc, x_mark, params)
    jax.block_until_ready(out)

    ref = ref_forward(x_enc, x_mark, params, pred_len=P)
    assert out.shape == (B, P, C), out.shape
    # bf16 weights/activations on the MXU -> slightly looser tolerance vs f32 ref
    assert jnp.allclose(out, ref, rtol=5e-2, atol=5e-2), (
        float(jnp.max(jnp.abs(out - ref)))
    )
    print("KERNEL_OK")
</pallas_src>

<mosaic_0001>
module attributes {stable_mosaic.version = 11 : i64} {
  func.func @rnn_forecast_kernel(%arg0: i32, %arg1: memref<1x16x16xbf16, #tpu.memory_space<vmem>>, %arg2: memref<8x128xf32, #tpu.memory_space<vmem>>, %arg3: memref<16x128xbf16, #tpu.memory_space<vmem>>, %arg4: memref<128x128xbf16, #tpu.memory_space<vmem>>, %arg5: memref<128x128xbf16, #tpu.memory_space<vmem>>, %arg6: memref<1x128xf32, #tpu.memory_space<vmem>>, %arg7: memref<128x128xbf16, #tpu.memory_space<vmem>>, %arg8: memref<1x128xf32, #tpu.memory_space<vmem>>, %arg9: memref<2x128xf32, #tpu.memory_space<vmem>>, %arg10: memref<16x128xf32, #tpu.memory_space<vmem>>) attributes {dimension_semantics = [#tpu.dimension_semantics<parallel>], iteration_bounds = array<i64: 1>, scalar_prefetch = 0 : i64, scratch_operands = 1 : i64, tpu.core_type = #tpu.core_type<tc>, window_params = [{transform_indices = @transform_0, window_bounds = array<i64: 1, 16, 16>}, {pipeline_mode = #tpu.pipeline_mode<synchronous>, transform_indices = @transform_1, window_bounds = array<i64: 8, 128>}, {pipeline_mode = #tpu.pipeline_mode<synchronous>, transform_indices = @transform_2, window_bounds = array<i64: 16, 128>}, {pipeline_mode = #tpu.pipeline_mode<synchronous>, transform_indices = @transform_3, window_bounds = array<i64: 128, 128>}, {pipeline_mode = #tpu.pipeline_mode<synchronous>, transform_indices = @transform_4, window_bounds = array<i64: 128, 128>}, {pipeline_mode = #tpu.pipeline_mode<synchronous>, transform_indices = @transform_5, window_bounds = array<i64: 1, 128>}, {pipeline_mode = #tpu.pipeline_mode<synchronous>, transform_indices = @transform_6, window_bounds = array<i64: 128, 128>}, {pipeline_mode = #tpu.pipeline_mode<synchronous>, transform_indices = @transform_7, window_bounds = array<i64: 1, 128>}, {transform_indices = @transform_8, window_bounds = array<i64: 2, 128>}]} {
    %c0 = arith.constant 0 : index
    %c0_0 = arith.constant 0 : index
    %c0_1 = arith.constant 0 : index
    %0 = vector.load %arg1[%c0, %c0_0, %c0_1] : memref<1x16x16xbf16, #tpu.memory_space<vmem>>, vector<1x16x16xbf16>
    %1 = vector.shape_cast %0 : vector<1x16x16xbf16> to vector<16x16xbf16>
    %c0_2 = arith.constant 0 : index
    %c0_3 = arith.constant 0 : index
    %2 = vector.load %arg3[%c0_2, %c0_3] : memref<16x128xbf16, #tpu.memory_space<vmem>>, vector<16x128xbf16>
    %cst = arith.constant dense<0.000000e+00> : vector<16x128xf32>
    %3 = tpu.matmul %1, %2, %cst {dimension_numbers = #tpu.dot_dimension_numbers<[1], [0], [0], [1], [0, 0, 1, 1], [], []>} : vector<16x16xbf16>, vector<16x128xbf16>, vector<16x128xf32> -> vector<16x128xf32>
    %c0_4 = arith.constant 0 : index
    %c0_5 = arith.constant 0 : index
    %4 = vector.load %arg10[%c0_4, %c0_5] : memref<16x128xf32, #tpu.memory_space<vmem>>, vector<16x128xf32>
    tpu.vector_store %arg10[%c0_4, %c0_5], %3 {strides = array<i32>} : memref<16x128xf32, #tpu.memory_space<vmem>>, vector<16x128xf32>,
    %c0_6 = arith.constant 0 : index
    %c0_7 = arith.constant 0 : index
    %5 = vector.load %arg10[%c0_6, %c0_7] : memref<16x128xf32, #tpu.memory_space<vmem>>, vector<2x128xf32>
    %c0_8 = arith.constant 0 : index
    %c0_9 = arith.constant 0 : index
    %6 = vector.load %arg2[%c0_8, %c0_9] : memref<8x128xf32, #tpu.memory_space<vmem>>, vector<1x128xf32>
    %7 = vector.broadcast %6 : vector<1x128xf32> to vector<2x128xf32>
    %8 = arith.addf %5, %7 : vector<2x128xf32>
    %c0_10 = arith.constant 0 : index
    %c0_11 = arith.constant 0 : index
    %9 = vector.load %arg10[%c0_10, %c0_11] : memref<16x128xf32, #tpu.memory_space<vmem>>, vector<2x128xf32>
    tpu.vector_store %arg10[%c0_10, %c0_11], %8 {strides = array<i32>} : memref<16x128xf32, #tpu.memory_space<vmem>>, vector<2x128xf32>,
    %c2 = arith.constant 2 : index
    %c0_12 = arith.constant 0 : index
    %10 = vector.load %arg10[%c2, %c0_12] : memref<16x128xf32, #tpu.memory_space<vmem>>, vector<2x128xf32>
    %c1 = arith.constant 1 : index
    %c0_13 = arith.constant 0 : index
    %11 = vector.load %arg2[%c1, %c0_13] : memref<8x128xf32, #tpu.memory_space<vmem>>, vector<1x128xf32>
    %12 = vector.broadcast %11 : vector<1x128xf32> to vector<2x128xf32>
    %13 = arith.addf %10, %12 : vector<2x128xf32>
    %c2_14 = arith.constant 2 : index
    %c0_15 = arith.constant 0 : index
    %14 = vector.load %arg10[%c2_14, %c0_15] : memref<16x128xf32, #tpu.memory_space<vmem>>, vector<2x128xf32>
    tpu.vector_store %arg10[%c2_14, %c0_15], %13 {strides = array<i32>} : memref<16x128xf32, #tpu.memory_space<vmem>>, vector<2x128xf32>,
    %c4 = arith.constant 4 : index
    %c0_16 = arith.constant 0 : index
    %15 = vector.load %arg10[%c4, %c0_16] : memref<16x128xf32, #tpu.memory_space<vmem>>, vector<2x128xf32>
    %c2_17 = arith.constant 2 : index
    %c0_18 = arith.constant 0 : index
    %16 = vector.load %arg2[%c2_17, %c0_18] : memref<8x128xf32, #tpu.memory_space<vmem>>, vector<1x128xf32>
    %17 = vector.broadcast %16 : vector<1x128xf32> to vector<2x128xf32>
    %18 = arith.addf %15, %17 : vector<2x128xf32>
    %c4_19 = arith.constant 4 : index
    %c0_20 = arith.constant 0 : index
    %19 = vector.load %arg10[%c4_19, %c0_20] : memref<16x128xf32, #tpu.memory_space<vmem>>, vector<2x128xf32>
    tpu.vector_store %arg10[%c4_19, %c0_20], %18 {strides = array<i32>} : memref<16x128xf32, #tpu.memory_space<vmem>>, vector<2x128xf32>,
    %c6 = arith.constant 6 : index
    %c0_21 = arith.constant 0 : index
    %20 = vector.load %arg10[%c6, %c0_21] : memref<16x128xf32, #tpu.memory_space<vmem>>, vector<2x128xf32>
    %c3 = arith.constant 3 : index
    %c0_22 = arith.constant 0 : index
    %21 = vector.load %arg2[%c3, %c0_22] : memref<8x128xf32, #tpu.memory_space<vmem>>, vector<1x128xf32>
    %22 = vector.broadcast %21 : vector<1x128xf32> to vector<2x128xf32>
    %23 = arith.addf %20, %22 : vector<2x128xf32>
    %c6_23 = arith.constant 6 : index
    %c0_24 = arith.constant 0 : index
    %24 = vector.load %arg10[%c6_23, %c0_24] : memref<16x128xf32, #tpu.memory_space<vmem>>, vector<2x128xf32>
    tpu.vector_store %arg10[%c6_23, %c0_24], %23 {strides = array<i32>} : memref<16x128xf32, #tpu.memory_space<vmem>>, vector<2x128xf32>,
    %c8 = arith.constant 8 : index
    %c0_25 = arith.constant 0 : index
    %25 = vector.load %arg10[%c8, %c0_25] : memref<16x128xf32, #tpu.memory_space<vmem>>, vector<2x128xf32>
    %c4_26 = arith.constant 4 : index
    %c0_27 = arith.constant 0 : index
    %26 = vector.load %arg2[%c4_26, %c0_27] : memref<8x128xf32, #tpu.memory_space<vmem>>, vector<1x128xf32>
    %27 = vector.broadcast %26 : vector<1x128xf32> to vector<2x128xf32>
    %28 = arith.addf %25, %27 : vector<2x128xf32>
    %c8_28 = arith.constant 8 : index
    %c0_29 = arith.constant 0 : index
    %29 = vector.load %arg10[%c8_28, %c0_29] : memref<16x128xf32, #tpu.memory_space<vmem>>, vector<2x128xf32>
    tpu.vector_store %arg10[%c8_28, %c0_29], %28 {strides = array<i32>} : memref<16x128xf32, #tpu.memory_space<vmem>>, vector<2x128xf32>,
    %c10 = arith.constant 10 : index
    %c0_30 = arith.constant 0 : index
    %30 = vector.load %arg10[%c10, %c0_30] : memref<16x128xf32, #tpu.memory_space<vmem>>, vector<2x128xf32>
    %c5 = arith.constant 5 : index
    %c0_31 = arith.constant 0 : index
    %31 = vector.load %arg2[%c5, %c0_31] : memref<8x128xf32, #tpu.memory_space<vmem>>, vector<1x128xf32>
    %32 = vector.broadcast %31 : vector<1x128xf32> to vector<2x128xf32>
    %33 = arith.addf %30, %32 : vector<2x128xf32>
    %c10_32 = arith.constant 10 : index
    %c0_33 = arith.constant 0 : index
    %34 = vector.load %arg10[%c10_32, %c0_33] : memref<16x128xf32, #tpu.memory_space<vmem>>, vector<2x128xf32>
    tpu.vector_store %arg10[%c10_32, %c0_33], %33 {strides = array<i32>} : memref<16x128xf32, #tpu.memory_space<vmem>>, vector<2x128xf32>,
    %c12 = arith.constant 12 : index
    %c0_34 = arith.constant 0 : index
    %35 = vector.load %arg10[%c12, %c0_34] : memref<16x128xf32, #tpu.memory_space<vmem>>, vector<2x128xf32>
    %c6_35 = arith.constant 6 : index
    %c0_36 = arith.constant 0 : index
    %36 = vector.load %arg2[%c6_35, %c0_36] : memref<8x128xf32, #tpu.memory_space<vmem>>, vector<1x128xf32>
    %37 = vector.broadcast %36 : vector<1x128xf32> to vector<2x128xf32>
    %38 = arith.addf %35, %37 : vector<2x128xf32>
    %c12_37 = arith.constant 12 : index
    %c0_38 = arith.constant 0 : index
    %39 = vector.load %arg10[%c12_37, %c0_38] : memref<16x128xf32, #tpu.memory_space<vmem>>, vector<2x128xf32>
    tpu.vector_store %arg10[%c12_37, %c0_38], %38 {strides = array<i32>} : memref<16x128xf32, #tpu.memory_space<vmem>>, vector<2x128xf32>,
    %c14 = arith.constant 14 : index
    %c0_39 = arith.constant 0 : index
    %40 = vector.load %arg10[%c14, %c0_39] : memref<16x128xf32, #tpu.memory_space<vmem>>, vector<2x128xf32>
    %c7 = arith.constant 7 : index
    %c0_40 = arith.constant 0 : index
    %41 = vector.load %arg2[%c7, %c0_40] : memref<8x128xf32, #tpu.memory_space<vmem>>, vector<1x128xf32>
    %42 = vector.broadcast %41 : vector<1x128xf32> to vector<2x128xf32>
    %43 = arith.addf %40, %42 : vector<2x128xf32>
    %c14_41 = arith.constant 14 : index
    %c0_42 = arith.constant 0 : index
    %44 = vector.load %arg10[%c14_41, %c0_42] : memref<16x128xf32, #tpu.memory_space<vmem>>, vector<2x128xf32>
    tpu.vector_store %arg10[%c14_41, %c0_42], %43 {strides = array<i32>} : memref<16x128xf32, #tpu.memory_space<vmem>>, vector<2x128xf32>,
    %c0_43 = arith.constant 0 : index
    %c0_44 = arith.constant 0 : index
    %45 = vector.load %arg10[%c0_43, %c0_44] : memref<16x128xf32, #tpu.memory_space<vmem>>, vector<2x128xf32>
    %46 = math.tanh %45 : vector<2x128xf32>
    %c1_i32 = arith.constant 1 : i32
    %c2_i32 = arith.constant 2 : i32
    %47 = arith.muli %c1_i32, %c2_i32 : i32
    %48 = tpu.assume_multiple %47, 2 : i32
    %49 = arith.index_cast %48 : i32 to index
    %c0_45 = arith.constant 0 : index
    %50 = vector.load %arg10[%49, %c0_45] : memref<16x128xf32, #tpu.memory_space<vmem>>, vector<2x128xf32>
    %51 = arith.truncf %46 : vector<2x128xf32> to vector<2x128xbf16>
    %c0_46 = arith.constant 0 : index
    %c0_47 = arith.constant 0 : index
    %52 = vector.load %arg4[%c0_46, %c0_47] : memref<128x128xbf16, #tpu.memory_space<vmem>>, vector<128x128xbf16>
    %cst_48 = arith.constant dense<0.000000e+00> : vector<2x128xf32>
    %53 = tpu.matmul %51, %52, %cst_48 {dimension_numbers = #tpu.dot_dimension_numbers<[1], [0], [0], [1], [0, 0, 1, 1], [], []>} : vector<2x128xbf16>, vector<128x128xbf16>, vector<2x128xf32> -> vector<2x128xf32>
    %54 = arith.addf %50, %53 : vector<2x128xf32>
    %55 = math.tanh %54 : vector<2x128xf32>
    %c2_i32_49 = arith.constant 2 : i32
    %c2_i32_50 = arith.constant 2 : i32
    %56 = arith.muli %c2_i32_49, %c2_i32_50 : i32
    %57 = tpu.assume_multiple %56, 2 : i32
    %58 = arith.index_cast %57 : i32 to index
    %c0_51 = arith.constant 0 : index
    %59 = vector.load %arg10[%58, %c0_51] : memref<16x128xf32, #tpu.memory_space<vmem>>, vector<2x128xf32>
    %60 = arith.truncf %55 : vector<2x128xf32> to vector<2x128xbf16>
    %c0_52 = arith.constant 0 : index
    %c0_53 = arith.constant 0 : index
    %61 = vector.load %arg4[%c0_52, %c0_53] : memref<128x128xbf16, #tpu.memory_space<vmem>>, vector<128x128xbf16>
    %cst_54 = arith.constant dense<0.000000e+00> : vector<2x128xf32>
    %62 = tpu.matmul %60, %61, %cst_54 {dimension_numbers = #tpu.dot_dimension_numbers<[1], [0], [0], [1], [0, 0, 1, 1], [], []>} : vector<2x128xbf16>, vector<128x128xbf16>, vector<2x128xf32> -> vector<2x128xf32>
    %63 = arith.addf %59, %62 : vector<2x128xf32>
    %64 = math.tanh %63 : vector<2x128xf32>
    %c3_i32 = arith.constant 3 : i32
    %c2_i32_55 = arith.constant 2 : i32
    %65 = arith.muli %c3_i32, %c2_i32_55 : i32
    %66 = tpu.assume_multiple %65, 2 : i32
    %67 = arith.index_cast %66 : i32 to index
    %c0_56 = arith.constant 0 : index
    %68 = vector.load %arg10[%67, %c0_56] : memref<16x128xf32, #tpu.memory_space<vmem>>, vector<2x128xf32>
    %69 = arith.truncf %64 : vector<2x128xf32> to vector<2x128xbf16>
    %c0_57 = arith.constant 0 : index
    %c0_58 = arith.constant 0 : index
    %70 = vector.load %arg4[%c0_57, %c0_58] : memref<128x128xbf16, #tpu.memory_space<vmem>>, vector<128x128xbf16>
    %cst_59 = arith.constant dense<0.000000e+00> : vector<2x128xf32>
    %71 = tpu.matmul %69, %70, %cst_59 {dimension_numbers = #tpu.dot_dimension_numbers<[1], [0], [0], [1], [0, 0, 1, 1], [], []>} : vector<2x128xbf16>, vector<128x128xbf16>, vector<2x128xf32> -> vector<2x128xf32>
    %72 = arith.addf %68, %71 : vector<2x128xf32>
    %73 = math.tanh %72 : vector<2x128xf32>
    %c4_i32 = arith.constant 4 : i32
    %c2_i32_60 = arith.constant 2 : i32
    %74 = arith.muli %c4_i32, %c2_i32_60 : i32
    %75 = tpu.assume_multiple %74, 2 : i32
    %76 = arith.index_cast %75 : i32 to index
    %c0_61 = arith.constant 0 : index
    %77 = vector.load %arg10[%76, %c0_61] : memref<16x128xf32, #tpu.memory_space<vmem>>, vector<2x128xf32>
    %78 = arith.truncf %73 : vector<2x128xf32> to vector<2x128xbf16>
    %c0_62 = arith.constant 0 : index
    %c0_63 = arith.constant 0 : index
    %79 = vector.load %arg4[%c0_62, %c0_63] : memref<128x128xbf16, #tpu.memory_space<vmem>>, vector<128x128xbf16>
    %cst_64 = arith.constant dense<0.000000e+00> : vector<2x128xf32>
    %80 = tpu.matmul %78, %79, %cst_64 {dimension_numbers = #tpu.dot_dimension_numbers<[1], [0], [0], [1], [0, 0, 1, 1], [], []>} : vector<2x128xbf16>, vector<128x128xbf16>, vector<2x128xf32> -> vector<2x128xf32>
    %81 = arith.addf %77, %80 : vector<2x128xf32>
    %82 = math.tanh %81 : vector<2x128xf32>
    %c5_i32 = arith.constant 5 : i32
    %c2_i32_65 = arith.constant 2 : i32
    %83 = arith.muli %c5_i32, %c2_i32_65 : i32
    %84 = tpu.assume_multiple %83, 2 : i32
    %85 = arith.index_cast %84 : i32 to index
    %c0_66 = arith.constant 0 : index
    %86 = vector.load %arg10[%85, %c0_66] : memref<16x128xf32, #tpu.memory_space<vmem>>, vector<2x128xf32>
    %87 = arith.truncf %82 : vector<2x128xf32> to vector<2x128xbf16>
    %c0_67 = arith.constant 0 : index
    %c0_68 = arith.constant 0 : index
    %88 = vector.load %arg4[%c0_67, %c0_68] : memref<128x128xbf16, #tpu.memory_space<vmem>>, vector<128x128xbf16>
    %cst_69 = arith.constant dense<0.000000e+00> : vector<2x128xf32>
    %89 = tpu.matmul %87, %88, %cst_69 {dimension_numbers = #tpu.dot_dimension_numbers<[1], [0], [0], [1], [0, 0, 1, 1], [], []>} : vector<2x128xbf16>, vector<128x128xbf16>, vector<2x128xf32> -> vector<2x128xf32>
    %90 = arith.addf %86, %89 : vector<2x128xf32>
    %91 = math.tanh %90 : vector<2x128xf32>
    %c6_i32 = arith.constant 6 : i32
    %c2_i32_70 = arith.constant 2 : i32
    %92 = arith.muli %c6_i32, %c2_i32_70 : i32
    %93 = tpu.assume_multiple %92, 2 : i32
    %94 = arith.index_cast %93 : i32 to index
    %c0_71 = arith.constant 0 : index
    %95 = vector.load %arg10[%94, %c0_71] : memref<16x128xf32, #tpu.memory_space<vmem>>, vector<2x128xf32>
    %96 = arith.truncf %91 : vector<2x128xf32> to vector<2x128xbf16>
    %c0_72 = arith.constant 0 : index
    %c0_73 = arith.constant 0 : index
    %97 = vector.load %arg4[%c0_72, %c0_73] : memref<128x128xbf16, #tpu.memory_space<vmem>>, vector<128x128xbf16>
    %cst_74 = arith.constant dense<0.000000e+00> : vector<2x128xf32>
    %98 = tpu.matmul %96, %97, %cst_74 {dimension_numbers = #tpu.dot_dimension_numbers<[1], [0], [0], [1], [0, 0, 1, 1], [], []>} : vector<2x128xbf16>, vector<128x128xbf16>, vector<2x128xf32> -> vector<2x128xf32>
    %99 = arith.addf %95, %98 : vector<2x128xf32>
    %100 = math.tanh %99 : vector<2x128xf32>
    %c7_i32 = arith.constant 7 : i32
    %c2_i32_75 = arith.constant 2 : i32
    %101 = arith.muli %c7_i32, %c2_i32_75 : i32
    %102 = tpu.assume_multiple %101, 2 : i32
    %103 = arith.index_cast %102 : i32 to index
    %c0_76 = arith.constant 0 : index
    %104 = vector.load %arg10[%103, %c0_76] : memref<16x128xf32, #tpu.memory_space<vmem>>, vector<2x128xf32>
    %105 = arith.truncf %100 : vector<2x128xf32> to vector<2x128xbf16>
    %c0_77 = arith.constant 0 : index
    %c0_78 = arith.constant 0 : index
    %106 = vector.load %arg4[%c0_77, %c0_78] : memref<128x128xbf16, #tpu.memory_space<vmem>>, vector<128x128xbf16>
    %cst_79 = arith.constant dense<0.000000e+00> : vector<2x128xf32>
    %107 = tpu.matmul %105, %106, %cst_79 {dimension_numbers = #tpu.dot_dimension_numbers<[1], [0], [0], [1], [0, 0, 1, 1], [], []>} : vector<2x128xbf16>, vector<128x128xbf16>, vector<2x128xf32> -> vector<2x128xf32>
    %108 = arith.addf %104, %107 : vector<2x128xf32>
    %109 = math.tanh %108 : vector<2x128xf32>
    %c7_i32_80 = arith.constant 7 : i32
    %110 = arith.truncf %109 : vector<2x128xf32> to vector<2x128xbf16>
    %c0_81 = arith.constant 0 : index
    %c0_82 = arith.constant 0 : index
    %111 = vector.load %arg5[%c0_81, %c0_82] : memref<128x128xbf16, #tpu.memory_space<vmem>>, vector<128x128xbf16>
    %cst_83 = arith.constant dense<0.000000e+00> : vector<2x128xf32>
    %112 = tpu.matmul %110, %111, %cst_83 {dimension_numbers = #tpu.dot_dimension_numbers<[1], [0], [0], [1], [0, 0, 1, 1], [], []>} : vector<2x128xbf16>, vector<128x128xbf16>, vector<2x128xf32> -> vector<2x128xf32>
    %c0_84 = arith.constant 0 : index
    %c0_85 = arith.constant 0 : index
    %113 = vector.load %arg6[%c0_84, %c0_85] : memref<1x128xf32, #tpu.memory_space<vmem>>, vector<1x128xf32>
    %114 = vector.broadcast %113 : vector<1x128xf32> to vector<2x128xf32>
    %115 = arith.addf %112, %114 : vector<2x128xf32>
    %cst_86 = arith.constant 0.000000e+00 : f32
    %116 = vector.broadcast %cst_86 : f32 to vector<2x128xf32>
    %117 = arith.maximumf %115, %116 : vector<2x128xf32>
    %118 = arith.truncf %117 : vector<2x128xf32> to vector<2x128xbf16>
    %c0_87 = arith.constant 0 : index
    %c0_88 = arith.constant 0 : index
    %119 = vector.load %arg7[%c0_87, %c0_88] : memref<128x128xbf16, #tpu.memory_space<vmem>>, vector<128x128xbf16>
    %cst_89 = arith.constant dense<0.000000e+00> : vector<2x128xf32>
    %120 = tpu.matmul %118, %119, %cst_89 {dimension_numbers = #tpu.dot_dimension_numbers<[1], [0], [0], [1], [0, 0, 1, 1], [], []>} : vector<2x128xbf16>, vector<128x128xbf16>, vector<2x128xf32> -> vector<2x128xf32>
    %c0_90 = arith.constant 0 : index
    %c0_91 = arith.constant 0 : index
    %121 = vector.load %arg8[%c0_90, %c0_91] : memref<1x128xf32, #tpu.memory_space<vmem>>, vector<1x128xf32>
    %122 = vector.broadcast %121 : vector<1x128xf32> to vector<2x128xf32>
    %123 = arith.addf %120, %122 : vector<2x128xf32>
    %c0_92 = arith.constant 0 : index
    %c0_93 = arith.constant 0 : index
    %124 = vector.load %arg9[%c0_92, %c0_93] : memref<2x128xf32, #tpu.memory_space<vmem>>, vector<2x128xf32>
    tpu.vector_store %arg9[%c0_92, %c0_93], %123 {strides = array<i32>} : memref<2x128xf32, #tpu.memory_space<vmem>>, vector<2x128xf32>,
    return
  }
  func.func @transform_0(%arg0: i32) -> (i32, i32, i32) {
    %c0_i32 = arith.constant 0 : i32
    %c0_i32_0 = arith.constant 0 : i32
    %c0_i32_1 = arith.constant 0 : i32
    return %arg0, %c0_i32, %c0_i32_0 : i32, i32, i32
  }
  func.func @transform_1(%arg0: i32) -> (i32, i32) {
    %c0_i32 = arith.constant 0 : i32
    %c0_i32_0 = arith.constant 0 : i32
    %c0_i32_1 = arith.constant 0 : i32
    return %c0_i32, %c0_i32_0 : i32, i32
  }
  func.func @transform_2(%arg0: i32) -> (i32, i32) {
    %c0_i32 = arith.constant 0 : i32
    %c0_i32_0 = arith.constant 0 : i32
    %c0_i32_1 = arith.constant 0 : i32
    return %c0_i32, %c0_i32_0 : i32, i32
  }
  func.func @transform_3(%arg0: i32) -> (i32, i32) {
    %c0_i32 = arith.constant 0 : i32
    %c0_i32_0 = arith.constant 0 : i32
    %c0_i32_1 = arith.constant 0 : i32
    return %c0_i32, %c0_i32_0 : i32, i32
  }
  func.func @transform_4(%arg0: i32) -> (i32, i32) {
    %c0_i32 = arith.constant 0 : i32
    %c0_i32_0 = arith.constant 0 : i32
    %c0_i32_1 = arith.constant 0 : i32
    return %c0_i32, %c0_i32_0 : i32, i32
  }
  func.func @transform_5(%arg0: i32) -> (i32, i32) {
    %c0_i32 = arith.constant 0 : i32
    %c0_i32_0 = arith.constant 0 : i32
    %c0_i32_1 = arith.constant 0 : i32
    return %c0_i32, %c0_i32_0 : i32, i32
  }
  func.func @transform_6(%arg0: i32) -> (i32, i32) {
    %c0_i32 = arith.constant 0 : i32
    %c0_i32_0 = arith.constant 0 : i32
    %c0_i32_1 = arith.constant 0 : i32
    return %c0_i32, %c0_i32_0 : i32, i32
  }
  func.func @transform_7(%arg0: i32) -> (i32, i32) {
    %c0_i32 = arith.constant 0 : i32
    %c0_i32_0 = arith.constant 0 : i32
    %c0_i32_1 = arith.constant 0 : i32
    return %c0_i32, %c0_i32_0 : i32, i32
  }
  func.func @transform_8(%arg0: i32) -> (i32, i32) {
    %c0_i32 = arith.constant 0 : i32
    %c0_i32_0 = arith.constant 0 : i32
    return %arg0, %c0_i32 : i32, i32
  }
}

</mosaic_0001>

<bundles_post_ra>
// kernel: rnn_forecast.1
= control target key start
LH: loop header
LB: loop body
LE: loop exit
PB: predicated region body
PF: predicated region fallthrough
CT: control target
= control target key end

     0   :  { %vm45_vm0 = vcmask 130048   ;;  %s807_s2 = inlined_call_operand.vmem [shape: bf16[16,128], index: 2, kind: input, shape index: {}]   ;;  %s808_s0 = inlined_call_operand.vmem [shape: bf16[1,16,16], index: 0, kind: input, shape index: {}]   ;;  %s809_s3 = inlined_call_operand.vmem [shape: bf16[128,128], index: 3, kind: input, shape index: {}]   ;;  %s810_s1 = inlined_call_operand.vmem [shape: f32[8,128], index: 1, kind: input, shape index: {}]   ;;  %s811_s4 = inlined_call_operand.vmem [shape: bf16[128,128], index: 4, kind: input, shape index: {}]   ;;  %s812_s5 = inlined_call_operand.vmem [shape: f32[1,128], index: 5, kind: input, shape index: {}]   ;;  %s813_s6 = inlined_call_operand.vmem [shape: bf16[128,128], index: 6, kind: input, shape index: {}]   ;;  %s814_s7 = inlined_call_operand.vmem [shape: f32[1,128], index: 7, kind: input, shape index: {}]   ;;  %s815_s8 = inlined_call_operand.vmem [shape: f32[2,128], index: 8, kind: output, shape index: {}]  }
   0x1   :  { %v573_v0 = vld [vmem:[%s807_s2] sm:$0xff]  ;;  %v581_v2 = vld [vmem:[%s809_s3 + $0x38] sm:$0xff]  ;;  %v580_v3 = vld [vmem:[%s809_s3 + $0x30] sm:$0xff] }
   0x2   :  { %v572_v1 = vld [vmem:[%s808_s0] sm:$0xff]  ;;  %56 = vmatpush.bf16.msra.mxu0 %v573_v0  ;;  %174 = vmatpush.bf16.msra.mxu1 %v581_v2  ;;  %v579_v4 = vld [vmem:[%s809_s3 + $0x28] sm:$0xff]  ;;  %v577_v6 = vld [vmem:[%s809_s3 + $0x18] sm:$0xff] }
   0x3   :  { %192 = vmatpush.bf16.msra.mxu2 %v581_v2  ;;  %210 = vmatpush.bf16.msra.mxu3 %v581_v2  ;;  %v578_v5 = vld [vmem:[%s809_s3 + $0x20] sm:$0xff]  ;;  %v693_v7 = vld [vmem:[%s809_s3 + $0x10] sm:$0xff]  ;;  %v700_v8 = vld [vmem:[%s809_s3 + $0x8] sm:$0xff] }
   0x4   :  { %v708_v9 = vld [vmem:[%s809_s3] sm:$0xff] }
   0x5   :  { %475 = vmatmul.msk.bf16.vlgmr.msra.gmra.mxu0 %vm45_vm0, %v572_v1  ;;  %v598_v11 = vld [vmem:[%s810_s1] ss:$0 sm:$0xff]  ;;  %v599_v12 = vld [vmem:[%s810_s1 + $0x1] ss:$0 sm:$0xff]  ;;  %v600_v13 = vld [vmem:[%s810_s1 + $0x2] ss:$0 sm:$0xff] }
   0x6   :  { %228 = vmatpush.bf16.msrb.mxu0 %v581_v2  ;;  %175 = vmatpush.bf16.msra.mxu1 %v580_v3  ;;  %v601_v14 = vld [vmem:[%s810_s1 + $0x3] ss:$0 sm:$0xff]  ;;  %v602_v24 = vld [vmem:[%s810_s1 + $0x4] ss:$0 sm:$0xff]  ;;  %v603_v25 = vld [vmem:[%s810_s1 + $0x5] ss:$0 sm:$0xff] }
   0x7   :  { %193 = vmatpush.bf16.msra.mxu2 %v580_v3  ;;  %211 = vmatpush.bf16.msra.mxu3 %v580_v3  ;;  %v604_v26 = vld [vmem:[%s810_s1 + $0x6] ss:$0 sm:$0xff]  ;;  %v605_v27 = vld [vmem:[%s810_s1 + $0x7] ss:$0 sm:$0xff] }
   0xa   :  { %229 = vmatpush.bf16.msrb.mxu0 %v580_v3  ;;  %176 = vmatpush.bf16.msra.mxu1 %v579_v4 }
   0xb   :  { %194 = vmatpush.bf16.msra.mxu2 %v579_v4  ;;  %212 = vmatpush.bf16.msra.mxu3 %v579_v4 }
   0xe   :  { %230 = vmatpush.bf16.msrb.mxu0 %v579_v4  ;;  %177 = vmatpush.bf16.msra.mxu1 %v578_v5 }
   0xf   :  { %195 = vmatpush.bf16.msra.mxu2 %v578_v5  ;;  %213 = vmatpush.bf16.msra.mxu3 %v578_v5 }
  0x12   :  { %231 = vmatpush.bf16.msrb.mxu0 %v578_v5  ;;  %178 = vmatpush.bf16.msra.mxu1 %v577_v6 }
  0x13   :  { %196 = vmatpush.bf16.msra.mxu2 %v577_v6  ;;  %214 = vmatpush.bf16.msra.mxu3 %v577_v6 }
  0x16   :  { %232 = vmatpush.bf16.msrb.mxu0 %v577_v6  ;;  %179 = vmatpush.bf16.msra.mxu1 %v693_v7 }
  0x17   :  { %197 = vmatpush.bf16.msra.mxu2 %v693_v7  ;;  %215 = vmatpush.bf16.msra.mxu3 %v693_v7 }
  0x1a   :  { %233 = vmatpush.bf16.msrb.mxu0 %v693_v7  ;;  %180 = vmatpush.bf16.msra.mxu1 %v700_v8 }
  0x1b   :  { %198 = vmatpush.bf16.msra.mxu2 %v700_v8  ;;  %216 = vmatpush.bf16.msra.mxu3 %v700_v8 }
  0x1e   :  { %234 = vmatpush.bf16.msrb.mxu0 %v700_v8  ;;  %181 = vmatpush.bf16.msra.mxu1 %v708_v9 }
  0x1f   :  { %199 = vmatpush.bf16.msra.mxu2 %v708_v9  ;;  %217 = vmatpush.bf16.msra.mxu3 %v708_v9 }
  0x22   :  { %235 = vmatpush.bf16.msrb.mxu0 %v708_v9  ;;  %246 = vmatpush.bf16.msrb.mxu1 %v581_v2 }
  0x23   :  { %264 = vmatpush.bf16.msrb.mxu2 %v581_v2  ;;  %282 = vmatpush.bf16.msrb.mxu3 %v581_v2 }
  0x26   :  { %247 = vmatpush.bf16.msrb.mxu1 %v580_v3 }
  0x27   :  { %265 = vmatpush.bf16.msrb.mxu2 %v580_v3  ;;  %283 = vmatpush.bf16.msrb.mxu3 %v580_v3 }
  0x2a   :  { %248 = vmatpush.bf16.msrb.mxu1 %v579_v4 }
  0x2b   :  { %266 = vmatpush.bf16.msrb.mxu2 %v579_v4  ;;  %284 = vmatpush.bf16.msrb.mxu3 %v579_v4 }
  0x2e   :  { %249 = vmatpush.bf16.msrb.mxu1 %v578_v5 }
  0x2f   :  { %267 = vmatpush.bf16.msrb.mxu2 %v578_v5  ;;  %285 = vmatpush.bf16.msrb.mxu3 %v578_v5  ;;  %v589_v5 = vld [vmem:[%s811_s4 + $0x38] sm:$0xff] }
  0x30   :  { %366 = vmatpush.bf16.msra.mxu0 %v589_v5 }
  0x32   :  { %250 = vmatpush.bf16.msrb.mxu1 %v577_v6 }
  0x33   :  { %268 = vmatpush.bf16.msrb.mxu2 %v577_v6  ;;  %286 = vmatpush.bf16.msrb.mxu3 %v577_v6  ;;  %v588_v6 = vld [vmem:[%s811_s4 + $0x30] sm:$0xff] }
  0x34   :  { %367 = vmatpush.bf16.msra.mxu0 %v588_v6 }
  0x36   :  { %251 = vmatpush.bf16.msrb.mxu1 %v693_v7 }
  0x37   :  { %269 = vmatpush.bf16.msrb.mxu2 %v693_v7  ;;  %287 = vmatpush.bf16.msrb.mxu3 %v693_v7  ;;  %v587_v7 = vld [vmem:[%s811_s4 + $0x28] sm:$0xff] }
  0x38   :  { %368 = vmatpush.bf16.msra.mxu0 %v587_v7 }
  0x3a   :  { %252 = vmatpush.bf16.msrb.mxu1 %v700_v8 }
  0x3b   :  { %270 = vmatpush.bf16.msrb.mxu2 %v700_v8  ;;  %288 = vmatpush.bf16.msrb.mxu3 %v700_v8  ;;  %v586_v8 = vld [vmem:[%s811_s4 + $0x20] sm:$0xff] }
  0x3c   :  { %369 = vmatpush.bf16.msra.mxu0 %v586_v8 }
  0x3e   :  { %253 = vmatpush.bf16.msrb.mxu1 %v708_v9 }
  0x3f   :  { %271 = vmatpush.bf16.msrb.mxu2 %v708_v9  ;;  %289 = vmatpush.bf16.msrb.mxu3 %v708_v9  ;;  %v585_v9 = vld [vmem:[%s811_s4 + $0x18] sm:$0xff] }
  0x40   :  { %370 = vmatpush.bf16.msra.mxu0 %v585_v9 }
  0x82   :  { %v58_v10 = vpop.f32.mrf.mxu0 }
  0x83   :  { %63 = vst [vmem:[#allocation2] sm:$0xff] %v58_v10 }
  0x8a   :  { %v65_v15 = vld [vmem:[#allocation2] sm:$0x3]  ;;  %v70_v16 = vld [vmem:[#allocation2 + $0x2] sm:$0x3]  ;;  %v75_v17 = vld [vmem:[#allocation2 + $0x4] sm:$0x3]  ;;  %v60_v18 = vpop.f32.mrf.mxu0 }
  0x8b   :  { %v68_v19 = vadd.f32 %v598_v11, %v65_v15  ;;  %v73_v20 = vadd.f32 %v599_v12, %v70_v16  ;;  %v78_v21 = vadd.f32 %v600_v13, %v75_v17  ;;  %v80_v22 = vld [vmem:[#allocation2 + $0x6] sm:$0x3]  ;;  %64 = vst [vmem:[#allocation2 + $0x8] sm:$0xff] %v60_v18  ;;  %v584_v16 = vld [vmem:[%s811_s4 + $0x10] sm:$0xff]  ;;  %v583_v17 = vld [vmem:[%s811_s4 + $0x8] sm:$0xff] }
  0x8c   :  { %v83_v23 = vadd.f32 %v601_v14, %v80_v22  ;;  %371 = vmatpush.bf16.msra.mxu0 %v584_v16  ;;  %v582_v18 = vld [vmem:[%s811_s4] sm:$0xff] }
  0x8d   :  { %69 = vst [vmem:[#allocation2] sm:$0x3] %v68_v19  ;;  %v597_v19 = vld [vmem:[%s813_s6 + $0x38] sm:$0xff]  ;;  %v594_v22 = vld [vmem:[%s813_s6 + $0x20] sm:$0xff] }
  0x8e   :  { %74 = vst [vmem:[#allocation2 + $0x2] sm:$0x3] %v73_v20  ;;  %v596_v20 = vld [vmem:[%s813_s6 + $0x30] sm:$0xff] }
  0x8f   :  { %79 = vst [vmem:[#allocation2 + $0x4] sm:$0x3] %v78_v21  ;;  %v595_v21 = vld [vmem:[%s813_s6 + $0x28] sm:$0xff] }
  0x90   :  { %84 = vst [vmem:[#allocation2 + $0x6] sm:$0x3] %v83_v23  ;;  %372 = vmatpush.bf16.msra.mxu0 %v583_v17  ;;  %v593_v23 = vld [vmem:[%s813_s6 + $0x18] sm:$0xff] }
  0x92   :  { %v85_v28 = vld [vmem:[#allocation2 + $0x8] sm:$0x3]  ;;  %v90_v29 = vld [vmem:[#allocation2 + $0xa] sm:$0x3]  ;;  %v95_v30 = vld [vmem:[#allocation2 + $0xc] sm:$0x3] }
  0x93   :  { %v88_v31 = vadd.f32 %v602_v24, %v85_v28  ;;  %v93_v32 = vadd.f32 %v603_v25, %v90_v29  ;;  %v98_v33 = vadd.f32 %v604_v26, %v95_v30  ;;  %v100_v34 = vld [vmem:[#allocation2 + $0xe] sm:$0x3]  ;;  %v592_v24 = vld [vmem:[%s813_s6 + $0x10] sm:$0xff] }
  0x94   :  { %v103_v35 = vadd.f32 %v605_v27, %v100_v34  ;;  %v105_v36 = vld [vmem:[#allocation2] sm:$0x3]  ;;  %373 = vmatpush.bf16.msra.mxu0 %v582_v18 }
  0x95   :  { %89 = vst [vmem:[#allocation2 + $0x8] sm:$0x3] %v88_v31  ;;  %608 = vtanh.f32 %v105_v36  ;;  %v108_v39 = vld [vmem:[#allocation2 + $0x2] sm:$0x3]  ;;  %v591_v31 = vld [vmem:[%s813_s6 + $0x8] sm:$0xff] }
  0x96   :  { %94 = vst [vmem:[#allocation2 + $0xa] sm:$0x3] %v93_v32  ;;  %v190_v45 = vld [vmem:[#allocation2 + $0x4] sm:$0x3] }
  0x97   :  { %99 = vst [vmem:[#allocation2 + $0xc] sm:$0x3] %v98_v33  ;;  %v208_v51 = vld [vmem:[#allocation2 + $0x6] sm:$0x3]  ;;  %v606_v33 = vld [vmem:[%s812_s5] ss:$0 sm:$0xff] }
  0x98   :  { %104 = vst [vmem:[#allocation2 + $0xe] sm:$0x3] %v103_v35  ;;  %v590_v32 = vld [vmem:[%s813_s6] sm:$0xff] }
  0x9b   :  { %v609_v37 = vpop.eup %608 }
  0x9c   :  { %v109_v38 = vpack.c.bf16 %v609_v37, %v609_v37  ;;  %v226_v57 = vld [vmem:[#allocation2 + $0x8] sm:$0x3] }
  0x9d   :  { %v244_v63 = vld [vmem:[#allocation2 + $0xa] sm:$0x3] }
  0x9e   :  { %182 = vmatmul.bf16.vlgmr.msra.gmra.mxu1 %v109_v38  ;;  %v262_v10 = vld [vmem:[#allocation2 + $0xc] sm:$0x3] }
  0x9f   :  { %449 = vmatpush.bf16.msra.mxu1 %v597_v19  ;;  %v280_v25 = vld [vmem:[#allocation2 + $0xe] sm:$0x3] }
  0xa3   :  { %450 = vmatpush.bf16.msra.mxu1 %v596_v20 }
  0xa7   :  { %451 = vmatpush.bf16.msra.mxu1 %v595_v21 }
  0xab   :  { %452 = vmatpush.bf16.msra.mxu1 %v594_v22 }
  0xaf   :  { %453 = vmatpush.bf16.msra.mxu1 %v593_v23 }
  0xb3   :  { %454 = vmatpush.bf16.msra.mxu1 %v592_v24 }
  0xb7   :  { %455 = vmatpush.bf16.msra.mxu1 %v591_v31 }
  0xbb   :  { %456 = vmatpush.bf16.msra.mxu1 %v590_v32 }
 0x11b   :  { %v183_v40 = vpop.f32.mrf.mxu1 }
 0x11c   :  { %v187_v41 = vadd.f32 %v183_v40, %v108_v39  ;;  %v607_v39 = vld [vmem:[%s814_s7] ss:$0 sm:$0xff] }
 0x11e   :  { %610 = vtanh.f32 %v187_v41 }
 0x123   :  { %v185_v42 = vpop.f32.mrf.mxu1 }
 0x124   :  { %v611_v43 = vpop.eup %610 }
 0x125   :  { %v191_v44 = vpack.c.bf16 %v611_v43, %v611_v43 }
 0x127   :  { %200 = vmatmul.bf16.vlgmr.msra.gmra.mxu2 %v191_v44 }
 0x1aa   :  { %v201_v46 = vpop.f32.mrf.mxu2 }
 0x1ab   :  { %v205_v47 = vadd.f32 %v201_v46, %v190_v45 }
 0x1ad   :  { %612 = vtanh.f32 %v205_v47 }
 0x1b2   :  { %v203_v48 = vpop.f32.mrf.mxu2 }
 0x1b3   :  { %v613_v49 = vpop.eup %612 }
 0x1b4   :  { %v209_v50 = vpack.c.bf16 %v613_v49, %v613_v49 }
 0x1b6   :  { %218 = vmatmul.bf16.vlgmr.msra.gmra.mxu3 %v209_v50 }
 0x239   :  { %v219_v52 = vpop.f32.mrf.mxu3 }
 0x23a   :  { %v223_v53 = vadd.f32 %v219_v52, %v208_v51 }
 0x23c   :  { %614 = vtanh.f32 %v223_v53 }
 0x241   :  { %v221_v54 = vpop.f32.mrf.mxu3 }
 0x242   :  { %v615_v55 = vpop.eup %614 }
 0x243   :  { %v227_v56 = vpack.c.bf16 %v615_v55, %v615_v55 }
 0x245   :  { %236 = vmatmul.bf16.vlgmr.msrb.gmra.mxu0 %v227_v56 }
 0x2c2   :  { %v237_v58 = vpop.f32.mrf.mxu0 }
 0x2c3   :  { %v241_v59 = vadd.f32 %v237_v58, %v226_v57 }
 0x2c5   :  { %616 = vtanh.f32 %v241_v59 }
 0x2ca   :  { %v239_v60 = vpop.f32.mrf.mxu0 }
 0x2cb   :  { %v617_v61 = vpop.eup %616 }
 0x2cc   :  { %v245_v62 = vpack.c.bf16 %v617_v61, %v617_v61 }
 0x2ce   :  { %254 = vmatmul.bf16.vlgmr.msrb.gmra.mxu1 %v245_v62 }
 0x34b   :  { %v255_v0 = vpop.f32.mrf.mxu1 }
 0x34c   :  { %v259_v1 = vadd.f32 %v255_v0, %v244_v63 }
 0x34e   :  { %618 = vtanh.f32 %v259_v1 }
 0x353   :  { %v257_v2 = vpop.f32.mrf.mxu1 }
 0x354   :  { %v619_v3 = vpop.eup %618 }
 0x355   :  { %v263_v4 = vpack.c.bf16 %v619_v3, %v619_v3 }
 0x357   :  { %272 = vmatmul.bf16.vlgmr.msrb.gmra.mxu2 %v263_v4 }
 0x3da   :  { %v273_v11 = vpop.f32.mrf.mxu2 }
 0x3db   :  { %v277_v12 = vadd.f32 %v273_v11, %v262_v10 }
 0x3dd   :  { %620 = vtanh.f32 %v277_v12 }
 0x3e2   :  { %v275_v13 = vpop.f32.mrf.mxu2 }
 0x3e3   :  { %v621_v14 = vpop.eup %620 }
 0x3e4   :  { %v281_v15 = vpack.c.bf16 %v621_v14, %v621_v14 }
 0x3e6   :  { %290 = vmatmul.bf16.vlgmr.msrb.gmra.mxu3 %v281_v15 }
 0x469   :  { %v291_v26 = vpop.f32.mrf.mxu3 }
 0x46a   :  { %v295_v27 = vadd.f32 %v291_v26, %v280_v25 }
 0x46c   :  { %622 = vtanh.f32 %v295_v27 }
 0x471   :  { %v293_v28 = vpop.f32.mrf.mxu3 }
 0x472   :  { %v623_v29 = vpop.eup %622 }
 0x473   :  { %v297_v30 = vpack.c.bf16 %v623_v29, %v623_v29 }
 0x475   :  { %374 = vmatmul.bf16.vlgmr.msra.gmra.mxu0 %v297_v30 }
 0x4f2   :  { %v375_v34 = vpop.f32.mrf.mxu0 }
 0x4f3   :  { %v376_v35 = vadd.f32 %v606_v33, %v375_v34 }
 0x4f5   :  { %v379_v36 = vmax.f32 %v376_v35, 0.0 }
 0x4f7   :  { %v380_v37 = vpack.c.bf16 %v379_v36, %v379_v36 }
 0x4f9   :  { %457 = vmatmul.bf16.vlgmr.msra.gmra.mxu1 %v380_v37 }
 0x4fa   :  { %v377_v38 = vpop.f32.mrf.mxu0 }
 0x576   :  { %v458_v40 = vpop.f32.mrf.mxu1 }
 0x577   :  { %v459_v41 = vadd.f32 %v607_v39, %v458_v40 }
 0x579   :  { %462 = vst [vmem:[%s815_s8] sm:$0x3] %v459_v41 }
 0x57e   :  { %v460_v42 = vpop.f32.mrf.mxu1 }

</bundles_post_ra>
